<compile_context>
chip_gen: v7x
topology: tpu7x:2x2x1
jax: 0.10.0
libtpu: 0.0.40
codegen_flags: <defaults>
</compile_context>

<pallas_src>
import math
from functools import partial

import jax
import jax.numpy as jnp
from jax import lax
from jax.experimental import pallas as pl
from jax.experimental.pallas import tpu as pltpu


# ----------------------------------------------------------------------------
# chip-aware sizing helpers
# ----------------------------------------------------------------------------

_VMEM_LIMIT_CACHE = None


def _vmem_limit_bytes():
    """~75% of physical VMEM: ~96 MiB on v5e/v6e, 48 MiB on v7x (capped)."""
    global _VMEM_LIMIT_CACHE
    if _VMEM_LIMIT_CACHE is None:
        cap = 64 * 1024 * 1024
        try:
            cap = int(pltpu.get_tpu_info().vmem_capacity_bytes)
        except Exception:
            pass
        _VMEM_LIMIT_CACHE = min((cap * 3) // 4, 112 * 1024 * 1024)
    return _VMEM_LIMIT_CACHE


def _ff_col_tile(n):
    """Reduction-tile width for the d_ff contractions; wider on 128-MiB chips."""
    pref = 1024 if _vmem_limit_bytes() >= 80 * 1024 * 1024 else 512
    if n <= pref:
        return n
    t = pref
    while t >= 128:
        if n % t == 0:
            return t
        t //= 2
    # Odd d_ff falls back to a single full-width tile (fine for demo shapes;
    # real odd sizes would need padding instead).
    return n


# ----------------------------------------------------------------------------
# Fused Pallas kernels
# ----------------------------------------------------------------------------

def _clip_attn_block_kernel(x_ref, g_ref, b_ref, wqkv_ref, bqkv_ref,
                            wo_ref, bo_ref, o_ref, attn_sc,
                            *, n_heads, d_head):
    # One batch element per program: LN1 + packed QKV proj + causal attention
    # over all heads + out-proj + residual, all in VMEM. Head outputs are
    # written straight into `attn_sc` slices (no concat, bounded live ranges).
    S = x_ref.shape[1]
    inner = n_heads * d_head

    x = x_ref[0].astype(jnp.float32)                             # (S, D)
    mu = jnp.mean(x, axis=-1, keepdims=True)
    xc = x - mu
    var = jnp.mean(xc * xc, axis=-1, keepdims=True)
    xn = (xc * lax.rsqrt(var + 1e-5) * g_ref[...] + b_ref[...]
          ).astype(jnp.bfloat16)

    qkv = (jnp.dot(xn, wqkv_ref[...], preferred_element_type=jnp.float32)
           + bqkv_ref[...]).astype(jnp.bfloat16)                 # (S, 3*inner)

    # causal mask built in-kernel: no (B*H,S,S) bias streamed from HBM
    row = lax.broadcasted_iota(jnp.int32, (S, S), 0)
    col = lax.broadcasted_iota(jnp.int32, (S, S), 1)
    causal = col <= row

    for h in range(n_heads):
        q = qkv[:, h * d_head:(h + 1) * d_head]
        k = qkv[:, inner + h * d_head:inner + (h + 1) * d_head]
        v = qkv[:, 2 * inner + h * d_head:2 * inner + (h + 1) * d_head]
        s = lax.dot_general(q, k, (((1,), (1,)), ((), ())),
                            preferred_element_type=jnp.float32)  # (S, S)
        s = jnp.where(causal, s, -1e30)
        s = s - jnp.max(s, axis=-1, keepdims=True)
        p = jnp.exp(s)
        p = p * pl.reciprocal(jnp.sum(p, axis=-1, keepdims=True), approx=True)
        attn_sc[:, h * d_head:(h + 1) * d_head] = jnp.dot(
            p.astype(jnp.bfloat16), v,
            preferred_element_type=jnp.float32).astype(jnp.bfloat16)

    o = jnp.dot(attn_sc[...], wo_ref[...], preferred_element_type=jnp.float32)
    o_ref[0] = (x + o + bo_ref[...]).astype(o_ref.dtype)


def _t5_attn_block_kernel(x_ref, g_ref, wqkv_ref, wo_ref, bias_ref,
                          o_ref, attn_sc, *, n_heads, d_head):
    # One batch element per program: RMSNorm + packed QKV proj + unscaled
    # attention with shared (H,S,S) relative bias + out-proj + residual.
    inner = n_heads * d_head

    x = x_ref[0].astype(jnp.float32)                             # (S, D)
    var = jnp.mean(x * x, axis=-1, keepdims=True)
    xn = (x * lax.rsqrt(var + 1e-6) * g_ref[...]).astype(jnp.bfloat16)

    qkv = jnp.dot(xn, wqkv_ref[...],
                  preferred_element_type=jnp.float32).astype(jnp.bfloat16)

    for h in range(n_heads):
        q = qkv[:, h * d_head:(h + 1) * d_head]
        k = qkv[:, inner + h * d_head:inner + (h + 1) * d_head]
        v = qkv[:, 2 * inner + h * d_head:2 * inner + (h + 1) * d_head]
        s = lax.dot_general(q, k, (((1,), (1,)), ((), ())),
                            preferred_element_type=jnp.float32)
        s = s + bias_ref[h].astype(jnp.float32)
        s = s - jnp.max(s, axis=-1, keepdims=True)
        p = jnp.exp(s)
        p = p * pl.reciprocal(jnp.sum(p, axis=-1, keepdims=True), approx=True)
        attn_sc[:, h * d_head:(h + 1) * d_head] = jnp.dot(
            p.astype(jnp.bfloat16), v,
            preferred_element_type=jnp.float32).astype(jnp.bfloat16)

    o = jnp.dot(attn_sc[...], wo_ref[...], preferred_element_type=jnp.float32)
    o_ref[0] = (x + o).astype(o_ref.dtype)


def _clip_mlp_kernel(x_ref, g_ref, b_ref, w1_ref, b1_ref, w2_ref, b2_ref,
                     o_ref, xn_sc, acc_sc):
    # LN2 + fc1 + quick_gelu + fc2 + residual; d_ff contraction tiled over the
    # trailing (arbitrary) grid axis with an f32 VMEM accumulator.
    k = pl.program_id(1)

    @pl.when(k == 0)
    def _():
        x = x_ref[0].astype(jnp.float32)
        mu = jnp.mean(x, axis=-1, keepdims=True)
        xc = x - mu
        var = jnp.mean(xc * xc, axis=-1, keepdims=True)
        xn = xc * lax.rsqrt(var + 1e-5) * g_ref[...] + b_ref[...]
        xn_sc[...] = xn.astype(jnp.bfloat16)
        acc_sc[...] = x + b2_ref[...]          # residual + final bias, once

    h = jnp.dot(xn_sc[...], w1_ref[...], preferred_element_type=jnp.float32)
    h = h + b1_ref[...]
    h = h * jax.nn.sigmoid(1.702 * h)          # quick_gelu, f32 on VPU/EUP
    acc_sc[...] += jnp.dot(h.astype(jnp.bfloat16), w2_ref[...],
                           preferred_element_type=jnp.float32)

    @pl.when(k == pl.num_programs(1) - 1)
    def _():
        o_ref[0] = acc_sc[...].astype(o_ref.dtype)


def _t5_ff_kernel(x_ref, g_ref, wi0_ref, wi1_ref, wo_ref, o_ref, xn_sc, acc_sc):
    # RMSNorm + gated-gelu FF (wi0/wi1) + down-proj + residual, d_ff tiled.
    k = pl.program_id(1)

    @pl.when(k == 0)
    def _():
        x = x_ref[0].astype(jnp.float32)
        var = jnp.mean(x * x, axis=-1, keepdims=True)
        xn = x * lax.rsqrt(var + 1e-6) * g_ref[...]
        xn_sc[...] = xn.astype(jnp.bfloat16)
        acc_sc[...] = x

    xn = xn_sc[...]
    h0 = jnp.dot(xn, wi0_ref[...], preferred_element_type=jnp.float32)
    h1 = jnp.dot(xn, wi1_ref[...], preferred_element_type=jnp.float32)
    c = 0.7978845608028654                     # sqrt(2/pi); "gelu_new"
    g0 = 0.5 * h0 * (1.0 + jnp.tanh(c * (h0 + 0.044715 * h0 * h0 * h0)))
    acc_sc[...] += jnp.dot((g0 * h1).astype(jnp.bfloat16), wo_ref[...],
                           preferred_element_type=jnp.float32)

    @pl.when(k == pl.num_programs(1) - 1)
    def _():
        o_ref[0] = acc_sc[...].astype(o_ref.dtype)


def _layernorm_kernel(x_ref, g_ref, b_ref, o_ref):
    x = x_ref[0].astype(jnp.float32)
    mu = jnp.mean(x, axis=-1, keepdims=True)
    xc = x - mu
    var = jnp.mean(xc * xc, axis=-1, keepdims=True)
    o_ref[0] = (xc * lax.rsqrt(var + 1e-5) * g_ref[...] + b_ref[...]
                ).astype(o_ref.dtype)


def _rmsnorm_kernel(x_ref, g_ref, o_ref):
    x = x_ref[0].astype(jnp.float32)
    var = jnp.mean(x * x, axis=-1, keepdims=True)
    o_ref[0] = (x * lax.rsqrt(var + 1e-6) * g_ref[...]).astype(o_ref.dtype)


# ----------------------------------------------------------------------------
# pallas_call wrappers (batch-parallel grids, aliased residual stream)
# ----------------------------------------------------------------------------

def clip_attn_block(x, g, b, w_qkv, b_qkv, wo, bo, n_heads, d_head):
    B, S, D = x.shape
    inner = n_heads * d_head
    return pl.pallas_call(
        partial(_clip_attn_block_kernel, n_heads=n_heads, d_head=d_head),
        out_shape=jax.ShapeDtypeStruct((B, S, D), jnp.float32),
        grid=(B,),
        in_specs=[
            pl.BlockSpec((1, S, D), lambda bb: (bb, 0, 0)),
            pl.BlockSpec((1, D), lambda bb: (0, 0)),
            pl.BlockSpec((1, D), lambda bb: (0, 0)),
            pl.BlockSpec((D, 3 * inner), lambda bb: (0, 0)),
            pl.BlockSpec((1, 3 * inner), lambda bb: (0, 0)),
            pl.BlockSpec((inner, D), lambda bb: (0, 0)),
            pl.BlockSpec((1, D), lambda bb: (0, 0)),
        ],
        out_specs=pl.BlockSpec((1, S, D), lambda bb: (bb, 0, 0)),
        scratch_shapes=[pltpu.VMEM((S, inner), jnp.bfloat16)],
        input_output_aliases={0: 0},
        compiler_params=pltpu.CompilerParams(
            dimension_semantics=("parallel",),
            vmem_limit_bytes=_vmem_limit_bytes()),
    )(x, g.reshape(1, D), b.reshape(1, D), w_qkv, b_qkv.reshape(1, 3 * inner),
      wo, bo.reshape(1, D))


def t5_attn_block(x, g, w_qkv, wo, bias_hss, n_heads, d_head):
    B, S, D = x.shape
    inner = n_heads * d_head
    return pl.pallas_call(
        partial(_t5_attn_block_kernel, n_heads=n_heads, d_head=d_head),
        out_shape=jax.ShapeDtypeStruct((B, S, D), jnp.float32),
        grid=(B,),
        in_specs=[
            pl.BlockSpec((1, S, D), lambda bb: (bb, 0, 0)),
            pl.BlockSpec((1, D), lambda bb: (0, 0)),
            pl.BlockSpec((D, 3 * inner), lambda bb: (0, 0)),
            pl.BlockSpec((inner, D), lambda bb: (0, 0)),
            pl.BlockSpec((n_heads, S, S), lambda bb: (0, 0, 0)),  # bf16 bias
        ],
        out_specs=pl.BlockSpec((1, S, D), lambda bb: (bb, 0, 0)),
        scratch_shapes=[pltpu.VMEM((S, inner), jnp.bfloat16)],
        input_output_aliases={0: 0},
        compiler_params=pltpu.CompilerParams(
            dimension_semantics=("parallel",),
            vmem_limit_bytes=_vmem_limit_bytes()),
    )(x, g.reshape(1, D), w_qkv, wo, bias_hss)


def clip_mlp(x, g, b, w1, b1, w2, b2):
    B, S, D = x.shape
    F = w1.shape[1]
    tf = _ff_col_tile(F)
    return pl.pallas_call(
        _clip_mlp_kernel,
        out_shape=jax.ShapeDtypeStruct((B, S, D), jnp.float32),
        grid=(B, F // tf),
        in_specs=[
            pl.BlockSpec((1, S, D), lambda i, k: (i, 0, 0)),
            pl.BlockSpec((1, D), lambda i, k: (0, 0)),
            pl.BlockSpec((1, D), lambda i, k: (0, 0)),
            pl.BlockSpec((D, tf), lambda i, k: (0, k)),
            pl.BlockSpec((1, tf), lambda i, k: (0, k)),
            pl.BlockSpec((tf, D), lambda i, k: (k, 0)),
            pl.BlockSpec((1, D), lambda i, k: (0, 0)),
        ],
        out_specs=pl.BlockSpec((1, S, D), lambda i, k: (i, 0, 0)),
        scratch_shapes=[pltpu.VMEM((S, D), jnp.bfloat16),
                        pltpu.VMEM((S, D), jnp.float32)],
        input_output_aliases={0: 0},
        compiler_params=pltpu.CompilerParams(
            dimension_semantics=("parallel", "arbitrary"),
            vmem_limit_bytes=_vmem_limit_bytes()),
    )(x, g.reshape(1, D), b.reshape(1, D), w1, b1.reshape(1, F), w2,
      b2.reshape(1, D))


def t5_ff(x, g, wi0, wi1, wo):
    B, S, D = x.shape
    F = wi0.shape[1]
    tf = _ff_col_tile(F)
    return pl.pallas_call(
        _t5_ff_kernel,
        out_shape=jax.ShapeDtypeStruct((B, S, D), jnp.float32),
        grid=(B, F // tf),
        in_specs=[
            pl.BlockSpec((1, S, D), lambda i, k: (i, 0, 0)),
            pl.BlockSpec((1, D), lambda i, k: (0, 0)),
            pl.BlockSpec((D, tf), lambda i, k: (0, k)),
            pl.BlockSpec((D, tf), lambda i, k: (0, k)),
            pl.BlockSpec((tf, D), lambda i, k: (k, 0)),
        ],
        out_specs=pl.BlockSpec((1, S, D), lambda i, k: (i, 0, 0)),
        scratch_shapes=[pltpu.VMEM((S, D), jnp.bfloat16),
                        pltpu.VMEM((S, D), jnp.float32)],
        input_output_aliases={0: 0},
        compiler_params=pltpu.CompilerParams(
            dimension_semantics=("parallel", "arbitrary"),
            vmem_limit_bytes=_vmem_limit_bytes()),
    )(x, g.reshape(1, D), wi0, wi1, wo)


def layernorm(x, g, b):
    B, S, D = x.shape
    return pl.pallas_call(
        _layernorm_kernel,
        out_shape=jax.ShapeDtypeStruct((B, S, D), jnp.float32),
        grid=(B,),
        in_specs=[pl.BlockSpec((1, S, D), lambda bb: (bb, 0, 0)),
                  pl.BlockSpec((1, D), lambda bb: (0, 0)),
                  pl.BlockSpec((1, D), lambda bb: (0, 0))],
        out_specs=pl.BlockSpec((1, S, D), lambda bb: (bb, 0, 0)),
        input_output_aliases={0: 0},
        compiler_params=pltpu.CompilerParams(
            dimension_semantics=("parallel",),
            vmem_limit_bytes=_vmem_limit_bytes()),
    )(x, g.reshape(1, D), b.reshape(1, D))


def rmsnorm(x, g):
    B, S, D = x.shape
    return pl.pallas_call(
        _rmsnorm_kernel,
        out_shape=jax.ShapeDtypeStruct((B, S, D), jnp.float32),
        grid=(B,),
        in_specs=[pl.BlockSpec((1, S, D), lambda bb: (bb, 0, 0)),
                  pl.BlockSpec((1, D), lambda bb: (0, 0))],
        out_specs=pl.BlockSpec((1, S, D), lambda bb: (bb, 0, 0)),
        input_output_aliases={0: 0},
        compiler_params=pltpu.CompilerParams(
            dimension_semantics=("parallel",),
            vmem_limit_bytes=_vmem_limit_bytes()),
    )(x, g.reshape(1, D))


# ----------------------------------------------------------------------------
# Model glue (embedding gather / relative-bias index math stay in JAX)
# ----------------------------------------------------------------------------

def clip_encode(p, tokens):
    B, S = tokens.shape
    D = p["tok_emb"].shape[1]
    H = p["n_heads"]
    Dh = D // H
    # TODO(synk): HF CLIPTokenizer + pretrained embedding gather stay in JAX glue.
    h = (jnp.take(p["tok_emb"], tokens, axis=0)
         + p["pos_emb"][None, :S, :]).astype(jnp.float32)        # (B, S, D)

    for lyr in p["layers"]:
        h = clip_attn_block(h, lyr["ln1_g"], lyr["ln1_b"], lyr["w_qkv"],
                            lyr["b_qkv"], lyr["wo"], lyr["bo"], H, Dh)
        h = clip_mlp(h, lyr["ln2_g"], lyr["ln2_b"], lyr["fc1_w"], lyr["fc1_b"],
                     lyr["fc2_w"], lyr["fc2_b"])

    return layernorm(h, p["lnf_g"], p["lnf_b"])                  # last_hidden_state


def _t5_rel_bucket(rel_pos, num_buckets, max_distance):
    nb = num_buckets // 2                                        # bidirectional encoder
    ret = (rel_pos > 0).astype(jnp.int32) * nb
    n = jnp.abs(rel_pos)
    max_exact = nb // 2
    is_small = n < max_exact
    n_safe = jnp.maximum(n, 1).astype(jnp.float32)
    val_large = max_exact + (
        jnp.log(n_safe / max_exact) / math.log(max_distance / max_exact)
        * (nb - max_exact)).astype(jnp.int32)
    val_large = jnp.minimum(val_large, nb - 1)
    return ret + jnp.where(is_small, n, val_large)


def t5_relative_bias(table, S, max_distance=128):
    num_buckets = table.shape[0]
    ctx = jnp.arange(S)[:, None]
    mem = jnp.arange(S)[None, :]
    buckets = _t5_rel_bucket(mem - ctx, num_buckets, max_distance)
    vals = jnp.take(table, buckets, axis=0)                      # (S, S, H)
    # bf16: halves DMA of the shared bias; f32 restored inside the kernel
    return jnp.transpose(vals, (2, 0, 1)).astype(jnp.bfloat16)   # (H, S, S)


def t5_encode(p, tokens):
    B, S = tokens.shape
    D = p["tok_emb"].shape[1]
    H = p["n_heads"]
    Dkv = p["d_kv"]
    # TODO(synk): HF T5Tokenizer + pretrained embedding gather stay in JAX glue.
    h = jnp.take(p["tok_emb"], tokens, axis=0).astype(jnp.float32)  # (B, S, D)

    # relative position bias: computed once, shared across layers and batch
    bias = t5_relative_bias(p["rel_bias"], S)

    for lyr in p["layers"]:
        h = t5_attn_block(h, lyr["ln1_g"], lyr["w_qkv"], lyr["wo"], bias, H, Dkv)
        h = t5_ff(h, lyr["ln2_g"], lyr["wi0"], lyr["wi1"], lyr["wo_ff"])

    return rmsnorm(h, p["lnf_g"])                                # last_hidden_state


def frozen_clip_t5_forward(clip_params, t5_params, tokens):
    # TODO(synk): tokenization (string -> ids) has no Pallas equivalent; this
    # forward consumes pre-tokenized int32 ids.
    clip_z = clip_encode(clip_params, tokens)
    t5_z = t5_encode(t5_params, tokens)
    return [clip_z, t5_z]


# ----------------------------------------------------------------------------
# Deterministic synthetic parameter init (frozen weights stored in bf16; the
# 1/sqrt(d_head) query scale is folded into the CLIP q weight AND q bias here)
# ----------------------------------------------------------------------------

class _KeyGen:
    def __init__(self, key):
        self._key = key

    def __call__(self):
        self._key, sub = jax.random.split(self._key)
        return sub


def _norm(kg, shape, std=0.02):
    return std * jax.random.normal(kg(), shape, dtype=jnp.float32)


def init_clip_params(kg, vocab, max_len, d, n_heads, n_layers, d_mlp):
    dh = d // n_heads
    scale = 1.0 / math.sqrt(dh)
    layers = []
    for _ in range(n_layers):
        wq = _norm(kg, (d, d)) * scale               # scale folded into frozen wq
        wk = _norm(kg, (d, d))
        wv = _norm(kg, (d, d))
        bq = jnp.zeros((d,), jnp.float32) * scale    # q bias pre-scaled too
        layers.append(dict(
            ln1_g=jnp.ones((d,), jnp.float32), ln1_b=jnp.zeros((d,), jnp.float32),
            w_qkv=jnp.concatenate([wq, wk, wv], axis=1).astype(jnp.bfloat16),
            b_qkv=jnp.concatenate([bq, jnp.zeros((d,)), jnp.zeros((d,))]
                                  ).astype(jnp.float32),
            wo=_norm(kg, (d, d)).astype(jnp.bfloat16),
            bo=jnp.zeros((d,), jnp.float32),
            ln2_g=jnp.ones((d,), jnp.float32), ln2_b=jnp.zeros((d,), jnp.float32),
            fc1_w=_norm(kg, (d, d_mlp)).astype(jnp.bfloat16),
            fc1_b=jnp.zeros((d_mlp,), jnp.float32),
            fc2_w=_norm(kg, (d_mlp, d)).astype(jnp.bfloat16),
            fc2_b=jnp.zeros((d,), jnp.float32),
        ))
    return dict(
        n_heads=n_heads,
        tok_emb=_norm(kg, (vocab, d)),
        pos_emb=_norm(kg, (max_len, d)),
        layers=layers,
        lnf_g=jnp.ones((d,), jnp.float32), lnf_b=jnp.zeros((d,), jnp.float32),
    )


def init_t5_params(kg, vocab, d, n_heads, d_kv, n_layers, d_ff, num_buckets=32):
    inner = n_heads * d_kv
    layers = []
    for _ in range(n_layers):
        wq = _norm(kg, (d, inner))
        wk = _norm(kg, (d, inner))
        wv = _norm(kg, (d, inner))
        layers.append(dict(
            ln1_g=jnp.ones((d,), jnp.float32),
            w_qkv=jnp.concatenate([wq, wk, wv], axis=1).astype(jnp.bfloat16),
            wo=_norm(kg, (inner, d)).astype(jnp.bfloat16),
            ln2_g=jnp.ones((d,), jnp.float32),
            wi0=_norm(kg, (d, d_ff)).astype(jnp.bfloat16),
            wi1=_norm(kg, (d, d_ff)).astype(jnp.bfloat16),
            wo_ff=_norm(kg, (d_ff, d)).astype(jnp.bfloat16),
        ))
    return dict(
        n_heads=n_heads, d_kv=d_kv,
        tok_emb=_norm(kg, (vocab, d)),
        rel_bias=_norm(kg, (num_buckets, n_heads)),   # HF default: 32 buckets
        layers=layers,
        lnf_g=jnp.ones((d,), jnp.float32),
    )


# ----------------------------------------------------------------------------

if __name__ == "__main__":
    key = jax.random.PRNGKey(0)
    k_tok, k_clip, k_t5 = jax.random.split(key, 3)

    # small shapes (real module: B x 77 tokens, clip d=768, t5-xl d=2048)
    B, S, VOCAB = 2, 8, 100
    D_CLIP, H_CLIP, L_CLIP, MLP_CLIP = 32, 4, 2, 128
    D_T5, H_T5, DKV_T5, L_T5, FF_T5 = 64, 4, 16, 2, 128

    tokens = jax.random.randint(k_tok, (B, S), 0, VOCAB, dtype=jnp.int32)

    clip_params = init_clip_params(_KeyGen(k_clip), VOCAB, S, D_CLIP, H_CLIP,
                                   L_CLIP, MLP_CLIP)
    t5_params = init_t5_params(_KeyGen(k_t5), VOCAB, D_T5, H_T5, DKV_T5,
                               L_T5, FF_T5)

    clip_z, t5_z = frozen_clip_t5_forward(clip_params, t5_params, tokens)
    jax.block_until_ready((clip_z, t5_z))

    assert clip_z.shape == (B, S, D_CLIP), clip_z.shape
    assert t5_z.shape == (B, S, D_T5), t5_z.shape
    assert bool(jnp.all(jnp.isfinite(clip_z))) and bool(jnp.all(jnp.isfinite(t5_z)))
    print("KERNEL_OK")
</pallas_src>

<mosaic_0001>
module attributes {stable_mosaic.version = 11 : i64} {
  func.func @_clip_attn_block_kernel(%arg0: i32, %arg1: memref<1x8x32xf32, #tpu.memory_space<vmem>>, %arg2: memref<1x32xf32, #tpu.memory_space<vmem>>, %arg3: memref<1x32xf32, #tpu.memory_space<vmem>>, %arg4: memref<32x96xbf16, #tpu.memory_space<vmem>>, %arg5: memref<1x96xf32, #tpu.memory_space<vmem>>, %arg6: memref<32x32xbf16, #tpu.memory_space<vmem>>, %arg7: memref<1x32xf32, #tpu.memory_space<vmem>>, %arg8: memref<1x8x32xf32, #tpu.memory_space<vmem>>, %arg9: memref<8x32xbf16, #tpu.memory_space<vmem>>) attributes {dimension_semantics = [#tpu.dimension_semantics<parallel>], iteration_bounds = array<i64: 2>, scalar_prefetch = 0 : i64, scratch_operands = 1 : i64, tpu.core_type = #tpu.core_type<tc>, window_params = [{transform_indices = @transform_0, window_bounds = array<i64: 1, 8, 32>}, {pipeline_mode = #tpu.pipeline_mode<synchronous>, transform_indices = @transform_1, window_bounds = array<i64: 1, 32>}, {pipeline_mode = #tpu.pipeline_mode<synchronous>, transform_indices = @transform_2, window_bounds = array<i64: 1, 32>}, {pipeline_mode = #tpu.pipeline_mode<synchronous>, transform_indices = @transform_3, window_bounds = array<i64: 32, 96>}, {pipeline_mode = #tpu.pipeline_mode<synchronous>, transform_indices = @transform_4, window_bounds = array<i64: 1, 96>}, {pipeline_mode = #tpu.pipeline_mode<synchronous>, transform_indices = @transform_5, window_bounds = array<i64: 32, 32>}, {pipeline_mode = #tpu.pipeline_mode<synchronous>, transform_indices = @transform_6, window_bounds = array<i64: 1, 32>}, {transform_indices = @transform_7, window_bounds = array<i64: 1, 8, 32>}]} {
    %c0 = arith.constant 0 : index
    %c0_0 = arith.constant 0 : index
    %c0_1 = arith.constant 0 : index
    %0 = vector.load %arg1[%c0, %c0_0, %c0_1] : memref<1x8x32xf32, #tpu.memory_space<vmem>>, vector<1x8x32xf32>
    %1 = vector.shape_cast %0 : vector<1x8x32xf32> to vector<8x32xf32>
    %cst = arith.constant dense<0.000000e+00> : vector<8xf32>
    %2 = vector.multi_reduction <add>, %1, %cst [1] : vector<8x32xf32> to vector<8xf32>
    %3 = vector.shape_cast %2 : vector<8xf32> to vector<8x1xf32>
    %cst_2 = arith.constant 3.200000e+01 : f32
    %4 = vector.broadcast %cst_2 : f32 to vector<8x1xf32>
    %5 = arith.divf %3, %4 : vector<8x1xf32>
    %6 = vector.broadcast %5 : vector<8x1xf32> to vector<8x32xf32>
    %7 = arith.subf %1, %6 : vector<8x32xf32>
    %8 = arith.mulf %7, %7 : vector<8x32xf32>
    %cst_3 = arith.constant dense<0.000000e+00> : vector<8xf32>
    %9 = vector.multi_reduction <add>, %8, %cst_3 [1] : vector<8x32xf32> to vector<8xf32>
    %10 = vector.shape_cast %9 : vector<8xf32> to vector<8x1xf32>
    %cst_4 = arith.constant 3.200000e+01 : f32
    %11 = vector.broadcast %cst_4 : f32 to vector<8x1xf32>
    %12 = arith.divf %10, %11 : vector<8x1xf32>
    %cst_5 = arith.constant 9.99999974E-6 : f32
    %13 = vector.broadcast %cst_5 : f32 to vector<8x1xf32>
    %14 = arith.addf %12, %13 : vector<8x1xf32>
    %15 = math.rsqrt %14 : vector<8x1xf32>
    %16 = vector.broadcast %15 : vector<8x1xf32> to vector<8x32xf32>
    %17 = arith.mulf %7, %16 : vector<8x32xf32>
    %c0_6 = arith.constant 0 : index
    %c0_7 = arith.constant 0 : index
    %18 = vector.load %arg2[%c0_6, %c0_7] : memref<1x32xf32, #tpu.memory_space<vmem>>, vector<1x32xf32>
    %19 = vector.broadcast %18 : vector<1x32xf32> to vector<8x32xf32>
    %20 = arith.mulf %17, %19 : vector<8x32xf32>
    %c0_8 = arith.constant 0 : index
    %c0_9 = arith.constant 0 : index
    %21 = vector.load %arg3[%c0_8, %c0_9] : memref<1x32xf32, #tpu.memory_space<vmem>>, vector<1x32xf32>
    %22 = vector.broadcast %21 : vector<1x32xf32> to vector<8x32xf32>
    %23 = arith.addf %20, %22 : vector<8x32xf32>
    %24 = arith.truncf %23 : vector<8x32xf32> to vector<8x32xbf16>
    %c0_10 = arith.constant 0 : index
    %c0_11 = arith.constant 0 : index
    %25 = vector.load %arg4[%c0_10, %c0_11] : memref<32x96xbf16, #tpu.memory_space<vmem>>, vector<32x96xbf16>
    %cst_12 = arith.constant dense<0.000000e+00> : vector<8x96xf32>
    %26 = tpu.matmul %24, %25, %cst_12 {dimension_numbers = #tpu.dot_dimension_numbers<[1], [0], [0], [1], [0, 0, 1, 1], [], []>} : vector<8x32xbf16>, vector<32x96xbf16>, vector<8x96xf32> -> vector<8x96xf32>
    %c0_13 = arith.constant 0 : index
    %c0_14 = arith.constant 0 : index
    %27 = vector.load %arg5[%c0_13, %c0_14] : memref<1x96xf32, #tpu.memory_space<vmem>>, vector<1x96xf32>
    %28 = vector.broadcast %27 : vector<1x96xf32> to vector<8x96xf32>
    %29 = arith.addf %26, %28 : vector<8x96xf32>
    %30 = arith.truncf %29 : vector<8x96xf32> to vector<8x96xbf16>
    %31 = tpu.iota {dimensions = array<i32: 0>} : vector<8x8xi32>
    %32 = tpu.iota {dimensions = array<i32: 1>} : vector<8x8xi32>
    %33 = arith.cmpi sle, %32, %31 : vector<8x8xi32>
    %34 = vector.extract_strided_slice %30 {offsets = [0, 0], sizes = [8, 8], strides = [1, 1]} : vector<8x96xbf16> to vector<8x8xbf16>
    %35 = vector.extract_strided_slice %30 {offsets = [0, 32], sizes = [8, 8], strides = [1, 1]} : vector<8x96xbf16> to vector<8x8xbf16>
    %36 = vector.extract_strided_slice %30 {offsets = [0, 64], sizes = [8, 8], strides = [1, 1]} : vector<8x96xbf16> to vector<8x8xbf16>
    %cst_15 = arith.constant dense<0.000000e+00> : vector<8x8xf32>
    %37 = tpu.matmul %34, %35, %cst_15 {dimension_numbers = #tpu.dot_dimension_numbers<[1], [1], [0], [0], [0, 0, 1, 0], [], []>} : vector<8x8xbf16>, vector<8x8xbf16>, vector<8x8xf32> -> vector<8x8xf32>
    %cst_16 = arith.constant -1.000000e+30 : f32
    %38 = vector.broadcast %cst_16 : f32 to vector<8x8xf32>
    %39 = arith.select %33, %37, %38 : vector<8x8xi1>, vector<8x8xf32>
    %cst_17 = arith.constant dense<0xFF800000> : vector<8xf32>
    %40 = vector.multi_reduction <maximumf>, %39, %cst_17 [1] : vector<8x8xf32> to vector<8xf32>
    %41 = vector.shape_cast %40 : vector<8xf32> to vector<8x1xf32>
    %42 = vector.broadcast %41 : vector<8x1xf32> to vector<8x8xf32>
    %43 = arith.subf %39, %42 : vector<8x8xf32>
    %44 = math.exp %43 : vector<8x8xf32>
    %cst_18 = arith.constant dense<0.000000e+00> : vector<8xf32>
    %45 = vector.multi_reduction <add>, %44, %cst_18 [1] : vector<8x8xf32> to vector<8xf32>
    %46 = vector.shape_cast %45 : vector<8xf32> to vector<8x1xf32>
    %47 = tpu.reciprocal %46 {approx = true} : vector<8x1xf32> -> vector<8x1xf32>
    %48 = vector.broadcast %47 : vector<8x1xf32> to vector<8x8xf32>
    %49 = arith.mulf %44, %48 : vector<8x8xf32>
    %50 = arith.truncf %49 : vector<8x8xf32> to vector<8x8xbf16>
    %cst_19 = arith.constant dense<0.000000e+00> : vector<8x8xf32>
    %51 = tpu.matmul %50, %36, %cst_19 {dimension_numbers = #tpu.dot_dimension_numbers<[1], [0], [0], [1], [0, 0, 1, 1], [], []>} : vector<8x8xbf16>, vector<8x8xbf16>, vector<8x8xf32> -> vector<8x8xf32>
    %52 = arith.truncf %51 : vector<8x8xf32> to vector<8x8xbf16>
    %c0_20 = arith.constant 0 : index
    %c0_21 = arith.constant 0 : index
    %53 = vector.load %arg9[%c0_20, %c0_21] : memref<8x32xbf16, #tpu.memory_space<vmem>>, vector<8x8xbf16>
    tpu.vector_store %arg9[%c0_20, %c0_21], %52 {strides = array<i32>} : memref<8x32xbf16, #tpu.memory_space<vmem>>, vector<8x8xbf16>,
    %54 = vector.extract_strided_slice %30 {offsets = [0, 8], sizes = [8, 8], strides = [1, 1]} : vector<8x96xbf16> to vector<8x8xbf16>
    %55 = vector.extract_strided_slice %30 {offsets = [0, 40], sizes = [8, 8], strides = [1, 1]} : vector<8x96xbf16> to vector<8x8xbf16>
    %56 = vector.extract_strided_slice %30 {offsets = [0, 72], sizes = [8, 8], strides = [1, 1]} : vector<8x96xbf16> to vector<8x8xbf16>
    %cst_22 = arith.constant dense<0.000000e+00> : vector<8x8xf32>
    %57 = tpu.matmul %54, %55, %cst_22 {dimension_numbers = #tpu.dot_dimension_numbers<[1], [1], [0], [0], [0, 0, 1, 0], [], []>} : vector<8x8xbf16>, vector<8x8xbf16>, vector<8x8xf32> -> vector<8x8xf32>
    %cst_23 = arith.constant -1.000000e+30 : f32
    %58 = vector.broadcast %cst_23 : f32 to vector<8x8xf32>
    %59 = arith.select %33, %57, %58 : vector<8x8xi1>, vector<8x8xf32>
    %cst_24 = arith.constant dense<0xFF800000> : vector<8xf32>
    %60 = vector.multi_reduction <maximumf>, %59, %cst_24 [1] : vector<8x8xf32> to vector<8xf32>
    %61 = vector.shape_cast %60 : vector<8xf32> to vector<8x1xf32>
    %62 = vector.broadcast %61 : vector<8x1xf32> to vector<8x8xf32>
    %63 = arith.subf %59, %62 : vector<8x8xf32>
    %64 = math.exp %63 : vector<8x8xf32>
    %cst_25 = arith.constant dense<0.000000e+00> : vector<8xf32>
    %65 = vector.multi_reduction <add>, %64, %cst_25 [1] : vector<8x8xf32> to vector<8xf32>
    %66 = vector.shape_cast %65 : vector<8xf32> to vector<8x1xf32>
    %67 = tpu.reciprocal %66 {approx = true} : vector<8x1xf32> -> vector<8x1xf32>
    %68 = vector.broadcast %67 : vector<8x1xf32> to vector<8x8xf32>
    %69 = arith.mulf %64, %68 : vector<8x8xf32>
    %70 = arith.truncf %69 : vector<8x8xf32> to vector<8x8xbf16>
    %cst_26 = arith.constant dense<0.000000e+00> : vector<8x8xf32>
    %71 = tpu.matmul %70, %56, %cst_26 {dimension_numbers = #tpu.dot_dimension_numbers<[1], [0], [0], [1], [0, 0, 1, 1], [], []>} : vector<8x8xbf16>, vector<8x8xbf16>, vector<8x8xf32> -> vector<8x8xf32>
    %72 = arith.truncf %71 : vector<8x8xf32> to vector<8x8xbf16>
    %c0_27 = arith.constant 0 : index
    %c8 = arith.constant 8 : index
    %73 = vector.load %arg9[%c0_27, %c8] : memref<8x32xbf16, #tpu.memory_space<vmem>>, vector<8x8xbf16>
    tpu.vector_store %arg9[%c0_27, %c8], %72 {strides = array<i32>} : memref<8x32xbf16, #tpu.memory_space<vmem>>, vector<8x8xbf16>,
    %74 = vector.extract_strided_slice %30 {offsets = [0, 16], sizes = [8, 8], strides = [1, 1]} : vector<8x96xbf16> to vector<8x8xbf16>
    %75 = vector.extract_strided_slice %30 {offsets = [0, 48], sizes = [8, 8], strides = [1, 1]} : vector<8x96xbf16> to vector<8x8xbf16>
    %76 = vector.extract_strided_slice %30 {offsets = [0, 80], sizes = [8, 8], strides = [1, 1]} : vector<8x96xbf16> to vector<8x8xbf16>
    %cst_28 = arith.constant dense<0.000000e+00> : vector<8x8xf32>
    %77 = tpu.matmul %74, %75, %cst_28 {dimension_numbers = #tpu.dot_dimension_numbers<[1], [1], [0], [0], [0, 0, 1, 0], [], []>} : vector<8x8xbf16>, vector<8x8xbf16>, vector<8x8xf32> -> vector<8x8xf32>
    %cst_29 = arith.constant -1.000000e+30 : f32
    %78 = vector.broadcast %cst_29 : f32 to vector<8x8xf32>
    %79 = arith.select %33, %77, %78 : vector<8x8xi1>, vector<8x8xf32>
    %cst_30 = arith.constant dense<0xFF800000> : vector<8xf32>
    %80 = vector.multi_reduction <maximumf>, %79, %cst_30 [1] : vector<8x8xf32> to vector<8xf32>
    %81 = vector.shape_cast %80 : vector<8xf32> to vector<8x1xf32>
    %82 = vector.broadcast %81 : vector<8x1xf32> to vector<8x8xf32>
    %83 = arith.subf %79, %82 : vector<8x8xf32>
    %84 = math.exp %83 : vector<8x8xf32>
    %cst_31 = arith.constant dense<0.000000e+00> : vector<8xf32>
    %85 = vector.multi_reduction <add>, %84, %cst_31 [1] : vector<8x8xf32> to vector<8xf32>
    %86 = vector.shape_cast %85 : vector<8xf32> to vector<8x1xf32>
    %87 = tpu.reciprocal %86 {approx = true} : vector<8x1xf32> -> vector<8x1xf32>
    %88 = vector.broadcast %87 : vector<8x1xf32> to vector<8x8xf32>
    %89 = arith.mulf %84, %88 : vector<8x8xf32>
    %90 = arith.truncf %89 : vector<8x8xf32> to vector<8x8xbf16>
    %cst_32 = arith.constant dense<0.000000e+00> : vector<8x8xf32>
    %91 = tpu.matmul %90, %76, %cst_32 {dimension_numbers = #tpu.dot_dimension_numbers<[1], [0], [0], [1], [0, 0, 1, 1], [], []>} : vector<8x8xbf16>, vector<8x8xbf16>, vector<8x8xf32> -> vector<8x8xf32>
    %92 = arith.truncf %91 : vector<8x8xf32> to vector<8x8xbf16>
    %c0_33 = arith.constant 0 : index
    %c16 = arith.constant 16 : index
    %93 = vector.load %arg9[%c0_33, %c16] : memref<8x32xbf16, #tpu.memory_space<vmem>>, vector<8x8xbf16>
    tpu.vector_store %arg9[%c0_33, %c16], %92 {strides = array<i32>} : memref<8x32xbf16, #tpu.memory_space<vmem>>, vector<8x8xbf16>,
    %94 = vector.extract_strided_slice %30 {offsets = [0, 24], sizes = [8, 8], strides = [1, 1]} : vector<8x96xbf16> to vector<8x8xbf16>
    %95 = vector.extract_strided_slice %30 {offsets = [0, 56], sizes = [8, 8], strides = [1, 1]} : vector<8x96xbf16> to vector<8x8xbf16>
    %96 = vector.extract_strided_slice %30 {offsets = [0, 88], sizes = [8, 8], strides = [1, 1]} : vector<8x96xbf16> to vector<8x8xbf16>
    %cst_34 = arith.constant dense<0.000000e+00> : vector<8x8xf32>
    %97 = tpu.matmul %94, %95, %cst_34 {dimension_numbers = #tpu.dot_dimension_numbers<[1], [1], [0], [0], [0, 0, 1, 0], [], []>} : vector<8x8xbf16>, vector<8x8xbf16>, vector<8x8xf32> -> vector<8x8xf32>
    %cst_35 = arith.constant -1.000000e+30 : f32
    %98 = vector.broadcast %cst_35 : f32 to vector<8x8xf32>
    %99 = arith.select %33, %97, %98 : vector<8x8xi1>, vector<8x8xf32>
    %cst_36 = arith.constant dense<0xFF800000> : vector<8xf32>
    %100 = vector.multi_reduction <maximumf>, %99, %cst_36 [1] : vector<8x8xf32> to vector<8xf32>
    %101 = vector.shape_cast %100 : vector<8xf32> to vector<8x1xf32>
    %102 = vector.broadcast %101 : vector<8x1xf32> to vector<8x8xf32>
    %103 = arith.subf %99, %102 : vector<8x8xf32>
    %104 = math.exp %103 : vector<8x8xf32>
    %cst_37 = arith.constant dense<0.000000e+00> : vector<8xf32>
    %105 = vector.multi_reduction <add>, %104, %cst_37 [1] : vector<8x8xf32> to vector<8xf32>
    %106 = vector.shape_cast %105 : vector<8xf32> to vector<8x1xf32>
    %107 = tpu.reciprocal %106 {approx = true} : vector<8x1xf32> -> vector<8x1xf32>
    %108 = vector.broadcast %107 : vector<8x1xf32> to vector<8x8xf32>
    %109 = arith.mulf %104, %108 : vector<8x8xf32>
    %110 = arith.truncf %109 : vector<8x8xf32> to vector<8x8xbf16>
    %cst_38 = arith.constant dense<0.000000e+00> : vector<8x8xf32>
    %111 = tpu.matmul %110, %96, %cst_38 {dimension_numbers = #tpu.dot_dimension_numbers<[1], [0], [0], [1], [0, 0, 1, 1], [], []>} : vector<8x8xbf16>, vector<8x8xbf16>, vector<8x8xf32> -> vector<8x8xf32>
    %112 = arith.truncf %111 : vector<8x8xf32> to vector<8x8xbf16>
    %c0_39 = arith.constant 0 : index
    %c24 = arith.constant 24 : index
    %113 = vector.load %arg9[%c0_39, %c24] : memref<8x32xbf16, #tpu.memory_space<vmem>>, vector<8x8xbf16>
    tpu.vector_store %arg9[%c0_39, %c24], %112 {strides = array<i32>} : memref<8x32xbf16, #tpu.memory_space<vmem>>, vector<8x8xbf16>,
    %c0_40 = arith.constant 0 : index
    %c0_41 = arith.constant 0 : index
    %114 = vector.load %arg9[%c0_40, %c0_41] : memref<8x32xbf16, #tpu.memory_space<vmem>>, vector<8x32xbf16>
    %c0_42 = arith.constant 0 : index
    %c0_43 = arith.constant 0 : index
    %115 = vector.load %arg6[%c0_42, %c0_43] : memref<32x32xbf16, #tpu.memory_space<vmem>>, vector<32x32xbf16>
    %cst_44 = arith.constant dense<0.000000e+00> : vector<8x32xf32>
    %116 = tpu.matmul %114, %115, %cst_44 {dimension_numbers = #tpu.dot_dimension_numbers<[1], [0], [0], [1], [0, 0, 1, 1], [], []>} : vector<8x32xbf16>, vector<32x32xbf16>, vector<8x32xf32> -> vector<8x32xf32>
    %117 = arith.addf %1, %116 : vector<8x32xf32>
    %c0_45 = arith.constant 0 : index
    %c0_46 = arith.constant 0 : index
    %118 = vector.load %arg7[%c0_45, %c0_46] : memref<1x32xf32, #tpu.memory_space<vmem>>, vector<1x32xf32>
    %119 = vector.broadcast %118 : vector<1x32xf32> to vector<8x32xf32>
    %120 = arith.addf %117, %119 : vector<8x32xf32>
    %c0_47 = arith.constant 0 : index
    %c0_48 = arith.constant 0 : index
    %c0_49 = arith.constant 0 : index
    %121 = vector.load %arg8[%c0_47, %c0_48, %c0_49] : memref<1x8x32xf32, #tpu.memory_space<vmem>>, vector<1x8x32xf32>
    %122 = vector.shape_cast %121 : vector<1x8x32xf32> to vector<8x32xf32>
    %123 = vector.shape_cast %120 : vector<8x32xf32> to vector<1x8x32xf32>
    tpu.vector_store %arg8[%c0_47, %c0_48, %c0_49], %123 {strides = array<i32>} : memref<1x8x32xf32, #tpu.memory_space<vmem>>, vector<1x8x32xf32>,
    return
  }
  func.func @transform_0(%arg0: i32) -> (i32, i32, i32) {
    %c0_i32 = arith.constant 0 : i32
    %c0_i32_0 = arith.constant 0 : i32
    %c0_i32_1 = arith.constant 0 : i32
    return %arg0, %c0_i32, %c0_i32_0 : i32, i32, i32
  }
  func.func @transform_1(%arg0: i32) -> (i32, i32) {
    %c0_i32 = arith.constant 0 : i32
    %c0_i32_0 = arith.constant 0 : i32
    %c0_i32_1 = arith.constant 0 : i32
    return %c0_i32, %c0_i32_0 : i32, i32
  }
  func.func @transform_2(%arg0: i32) -> (i32, i32) {
    %c0_i32 = arith.constant 0 : i32
    %c0_i32_0 = arith.constant 0 : i32
    %c0_i32_1 = arith.constant 0 : i32
    return %c0_i32, %c0_i32_0 : i32, i32
  }
  func.func @transform_3(%arg0: i32) -> (i32, i32) {
    %c0_i32 = arith.constant 0 : i32
    %c0_i32_0 = arith.constant 0 : i32
    %c0_i32_1 = arith.constant 0 : i32
    return %c0_i32, %c0_i32_0 : i32, i32
  }
  func.func @transform_4(%arg0: i32) -> (i32, i32) {
    %c0_i32 = arith.constant 0 : i32
    %c0_i32_0 = arith.constant 0 : i32
    %c0_i32_1 = arith.constant 0 : i32
    return %c0_i32, %c0_i32_0 : i32, i32
  }
  func.func @transform_5(%arg0: i32) -> (i32, i32) {
    %c0_i32 = arith.constant 0 : i32
    %c0_i32_0 = arith.constant 0 : i32
    %c0_i32_1 = arith.constant 0 : i32
    return %c0_i32, %c0_i32_0 : i32, i32
  }
  func.func @transform_6(%arg0: i32) -> (i32, i32) {
    %c0_i32 = arith.constant 0 : i32
    %c0_i32_0 = arith.constant 0 : i32
    %c0_i32_1 = arith.constant 0 : i32
    return %c0_i32, %c0_i32_0 : i32, i32
  }
  func.func @transform_7(%arg0: i32) -> (i32, i32, i32) {
    %c0_i32 = arith.constant 0 : i32
    %c0_i32_0 = arith.constant 0 : i32
    %c0_i32_1 = arith.constant 0 : i32
    return %arg0, %c0_i32, %c0_i32_0 : i32, i32, i32
  }
}

</mosaic_0001>

<bundles_post_ra>
// kernel: tpu_custom_call.1
= control target key start
LH: loop header
LB: loop body
LE: loop exit
PB: predicated region body
PF: predicated region fallthrough
CT: control target
= control target key end

     0   :  { %12 = vsyncpa [#allocation4], 0  ;;  %s1664_s0 = inlined_call_operand.hbm [shape: f32[2,8,32], index: 0, kind: input, shape index: {}, may-alias: {0,7}]   ;;  %s1665_s1 = inlined_call_operand.vmem [shape: f32[1,32], index: 1, kind: input, shape index: {}]   ;;  %s1666_s2 = inlined_call_operand.vmem [shape: f32[1,32], index: 2, kind: input, shape index: {}]   ;;  %s1667_s3 = inlined_call_operand.vmem [shape: bf16[32,96], index: 3, kind: input, shape index: {}]   ;;  %s1668_s4 = inlined_call_operand.vmem [shape: f32[1,96], index: 4, kind: input, shape index: {}]   ;;  %s1669_s5 = inlined_call_operand.vmem [shape: bf16[32,32], index: 5, kind: input, shape index: {}]   ;;  %s1670_s6 = inlined_call_operand.vmem [shape: f32[1,32], index: 6, kind: input, shape index: {}]   ;;  %s1671_s7 = inlined_call_operand.hbm [shape: f32[2,8,32], index: 7, kind: output, shape index: {}, may-alias: {0,7}]  }
   0x1   :  { %14 = vsyncpa [#allocation4 + $0x1], 0 }
   0x2   :  { %15 = vsyncpa [#allocation5], 0 }
   0x3   :  { %17 = vsyncpa [#allocation5 + $0x1], 0  ;;  %s1391_s24 = smov 0   ;;  %s1393_s25 = smov 0  }
   0x4   :  { %s1395_s26 = smov 0   ;;  %s1397_s27 = smov 0  }
   0x5 LB: > { %s1412_s28 = sadd.s32 4294967295, %s1331_s27   ;;  %s1029_s29 = sadd.s32 4294967294, %s1331_s27   ;;  %s1331_s27 = sphi %s1397_s27, %s1686_s27   ;;  %s1327_s26 = sphi %s1395_s26, %s1685_s26   ;;  %s1323_s25 = sphi %s1393_s25, %s1684_s25   ;;  %s1319_s24 = sphi %s1391_s24, %s1683_s24  }
   0x6   : > { %s1416_s30 = sadd.s32 1, %s1331_s27   ;;  %s30_s8 = sadd.s32 1, %s1327_s26 }
   0x7   : > { %s27_s9 = ssub.s32 %s1331_s27, %s1416_s30  ;;  %p37_p0 = scmp.ne.s32.totalorder %s1327_s26, %s1323_s25 }
   0x8   : > { %p28_p1 = scmp.eq.s32.totalorder %s27_s9, 0  ;;  %p38_p2 = scmp.eq.s32.totalorder %s1331_s27, 0 }
   0x9   : > { %p43_p3 = scmp.ne.s32.totalorder %s1323_s25, %s1319_s24  ;;  %p44_p4 = scmp.eq.s32.totalorder %s1412_s28, 0 }
   0xa   : > { %s1428_s10 = scalar_select %p28_p1, %s1327_s26, %s30_s8  }
   0xb   : > { %p1430_p5 = por %p38_p2, %p37_p0  ;;  %p1434_p6 = por %p44_p4, %p43_p3 }
   0xc   : > { %p193_p7 = scmp.eq.s32.totalorder %s1412_s28, 1  ;;  %p199_p8 = scmp.eq.s32.totalorder %s1029_s29, 1 }
   0xd   : > { %p1163_p10 = scmp.lt.s32.totalorder %s1331_s27, 2  ;;  %s237_s15 = sand.u32 1, %s1327_s26  }
   0xe   : > { %p1441_p11 = por %p193_p7, %p37_p0  ;;  %p1445_p12 = por %p199_p8, %p43_p3 }
   0xf   : > { %s1033_s16 = sshll.u32 %s1331_s27, 7  ;;  %s1032_s17 = sshll.u32 %s237_s15, 3 }
  0x10   : > { %s1675_s13 = scalar_select %p1441_p11, 1, 0 }
  0x11   : > { %s1676_s14 = scalar_select %p1445_p12, 1, 0 }
  0x12   : > { %s1454_s20 = scalar_lea.hbm %s1664_s0, %s1033_s16  ;;  %s241_s21 = scalar_lea.vmem [#allocation3], %s1032_s17 }
  0x13   : > { %s248_s22 = sshll.u32 %s241_s21, 4  ;;  %p1458_p13 = pnand %p1163_p10, %p1430_p5  ;;  %s1462_s22 = int_to_ptr.vmem [resolvable:$true] %s248_s22 }
  0x14   : > { %s238_s29 = scalar_lea.sflag [#allocation4], %s237_s15  ;;  %s1235_s8 = scalar_lea.hbm %s1454_s20, 128 }
  0x15   : > { %p1236_p2 = scmp.ne.s32.totalorder %s1454_s20, %s1235_s8  ;;  %p1237_p3 = pneg %p1458_p13 }
  0x16   : > { %s1240_s16 = scalar_lea.hbm %s1664_s0, 256  ;;  %p1241_p5 = scmp.lt.u32.totalorder %s1454_s20, %s1664_s0 }
  0x17   : > { %p1238_p4 = pnand %p1237_p3, %p1236_p2  ;;  %p1242_p8 = scmp.lt.u32.totalorder %s1240_s16, %s1235_s8 }
  0x18   : > { %p1244_p9 = scmp.lt.u32.totalorder %s1235_s8, %s1454_s20 }
  0x19   : > { %p1239_p7 = pneg %p1238_p4  ;;  %p1243_p10 = por %p1242_p8, %p1241_p5 }
  0x1b   : > { %p1245_p0 = por %p1244_p9, %p1243_p10 }
  0x1d   : > { %p1246_p1 = pnand %p1245_p0, %p1239_p7 }
  0x1f   : > { %1249 = shalt.err (!%p1246_p1)
}
  0x20   : > { %s1250_s15 = scalar_lea.vmem %s1462_s22, 128  ;;  %s1333_s19 = smov [#allocation3]  }
  0x21   : > { %p1251_p2 = scmp.ne.s32.totalorder %s1462_s22, %s1250_s15  ;;  %s1255_s21 = sshll.u32 %s1333_s19, 4  ;;  %s1256_s21 = int_to_ptr.vmem [resolvable:$false] %s1255_s21 }
  0x22   : > { %s1257_s9 = scalar_lea.vmem %s1256_s21, 256  ;;  %p1258_p11 = scmp.lt.s32.totalorder %s1462_s22, %s1256_s21 }
  0x23   : > { %p1253_p4 = pnand %p1251_p2, %p1237_p3  ;;  %p1259_p5 = scmp.lt.s32.totalorder %s1257_s9, %s1250_s15 }
  0x25   : > { %p1254_p12 = pneg %p1253_p4  ;;  %p1260_p8 = por %p1259_p5, %p1258_p11 }
  0x27   : > { %p1261_p9 = pnand %p1260_p8, %p1254_p12 }
  0x29   : > { %1264 = shalt.err (!%p1261_p9)
}
  0x2a   : > { %1158 = dma.hbm_to_vmem [thread:$0]  (!%p1458_p13), %s1454_s20, 128, %s1462_s22, %s238_s29  }
  0x2b   : > { %p1678_p0 = scmp.lt.s32.totalorder %s1331_s27, 3  ;;  %p1679_p1 = scmp.ge.s32.totalorder %s1331_s27, 1 }
  0x2d   : > { %p254_p3 = pnand %p1679_p1, %p1678_p0 }
  0x2e   : > { %s1496_s8 = sand.u32 (!%p254_p3), 1, %s1323_s25  }
  0x2f   : > { %257 = sbr.rel (%p254_p3) target bundleno = 1867 (0x74b), region = 48  ;;  %s1035_s11 = sshll.u32 (!%p254_p3), %s1496_s8, 3 }
  0x30   : > { %s260_s16 = scalar_lea.sflag (!%p254_p3), [#allocation4], %s1496_s8  ;;  %s263_s23 = scalar_lea.vmem (!%p254_p3), [#allocation3], %s1035_s11 }
  0x36   : > { %1310 = dma.done.wait (%p1434_p6), %s260_s16, 128  }
  0x37   : > { %1312 = vsyncadd (%p1434_p6), %s260_s16, 4294967168  ;;  %vm296_vm0 = vcmask 261120   ;;  %v1506_v0 = vld [vmem:[%s263_s23] sm:$0xff]  ;;  %v1334_v8 = vmov 0.0   ;;  %vm1335_vm1 = vmmov 0   ;;  %s1336_s16 = smov 120   ;;  %v395_v38 = vlaneseq }
  0x38   : > { %v297_v1 = vsel %vm296_vm0, %v1506_v0, 0.0  ;;  %v1213_v7 = vld [vmem:[%s1667_s3] sm:$0xff]   ;;  %1087 = vmatprep.subr.bf16.mxu0 %v1334_v8  ;;  %1091 = vmatprep.mubr.msk.bf16.mxu0 %vm1335_vm1, %v1334_v8  ;;  %v1214_v9 = vld [vmem:[%s1667_s3 + $0x8] sm:$0xff]   ;;  %s1337_s23 = smov 96   ;;  %s1338_s20 = smov 88   ;;  %vm403_vm2 = vcmask 64512  }
  0x39   : > { %298 = vadd.xlane.f32.xlu0 %v297_v1  ;;  %1088 = vmatpush3.bf16.msra.mxu0 %v1213_v7  ;;  %v1037_v14 = vld [vmem:[%s1665_s1] ss:$0 sm:$0xff]  ;;  %s1339_s22 = smov 80   ;;  %s1340_s12 = smov 112   ;;  %v396_v39 = vshrl.u32 %v395_v38, 7  ;;  %v398_v40 = vand.u32 127, %v395_v38 }
  0x3a   : > { %1095 = vmatprep.subr.bf16.mxu1 %v1334_v8  ;;  %1089 = vmatprep.subr.bf16.mxu0 %v1334_v8  ;;  %v1038_v16 = vld [vmem:[%s1666_s2] ss:$0 sm:$0xff]  ;;  %s1341_s29 = smov 72   ;;  %s1342_s17 = smov 104   ;;  %vm468_vm4 = vcmask 1043456   ;;  %vm513_vm5 = vcmask 60416  }
  0x3b   : > { %1097 = vmatprep.mubr.msk.bf16.mxu1 %vm1335_vm1, %v1334_v8  ;;  %v1039_v20 = vld [vmem:[%s1668_s4] ss:$0 sm:$0xff]  ;;  %vm399_vm3 = vcmp.le.s32.totalorder %v398_v40, %v396_v39  ;;  %s1343_s18 = smov 64   ;;  %s1344_s15 = smov 56   ;;  %vm633_vm6 = vcmask 126016   ;;  %vm753_vm7 = vcmask 191616  }
  0x3c   : > { %s1345_s19 = smov 48   ;;  %s1346_s21 = smov 40   ;;  %vm873_vm8 = vcmask 257216  }
  0x3d   : > { %1090 = vmatpush3.bf16.msra.mxu0 %v1214_v9  ;;  %s1347_s9 = smov 8   ;;  %p1680_p11 = scmp.ne.s32.totalorder %s1675_s13, 0 }
  0x3e   : > { %1101 = vmatprep.subr.bf16.mxu0 %v1334_v8 }
  0xc6   : > { %v299_v2 = vpop.xlane.xlu0 %298 }
  0xc7   : > { %v301_v3 = vmul.f32 0.03125, %v299_v2 }
  0xc9   : > { %v302_v4 = vsub.f32 %v1506_v0, %v301_v3 }
  0xcb   : > { %v303_v5 = vmul.f32 %v302_v4, %v302_v4 }
  0xcd   : > { %v304_v6 = vsel %vm296_vm0, %v303_v5, 0.0 }
  0xce   : > { %305 = vadd.xlane.f32.xlu0 %v304_v6 }
 0x15b   : > { %v306_v10 = vpop.xlane.xlu0 %305 }
 0x15c   : > { %v307_v11 = vmul.f32 0.03125, %v306_v10 }
 0x15e   : > { %v308_v12 = vadd.f32 1e-05, %v307_v11 }
 0x160   : > { %1217 = vrsqrt.f32 %v308_v12 }
 0x16a   : > { %v1218_v13 = vpop.eup %1217 }
 0x16b   : > { %v310_v15 = vmul.f32 %v1218_v13, %v302_v4 }
 0x16d   : > { %v318_v17 = vmul.f32 %v1037_v14, %v310_v15 }
 0x16f   : > { %v326_v18 = vadd.f32 %v1038_v16, %v318_v17 }
 0x171   : > { %v327_v19 = vpack.c.bf16 %v326_v18, %v326_v18 }
 0x173   : > { %1092 = vmatmul.mubr.msk.bf16.vlgmr.msra.gmra.mrb[0].mxu0 %vm296_vm0, %v327_v19 }
 0x174   : > { %1103 = vmatprep.mubr.msk.bf16.mxu0 %vm1335_vm1, %v1334_v8 }
 0x246   : > { %v388_v21 = vpop.f32.mrb[0].mxu0 }
 0x247   : > { %v389_v22 = vadd.f32 %v1039_v20, %v388_v21  ;;  %v1093_v23 = vpop.f32.mrb[1].mxu0 }
 0x248   : > { %v391_v24 = vpop.f32.mrb[2].mxu0 }
 0x249   : > { %v1538_v25 = vpack.c.bf16 %v389_v22, %v389_v22  ;;  %v1094_v26 = vpop.f32.mrb[3].mxu0 }
 0x24b   : > { %515 = vrot.lane.b32.xlu0 %v1538_v25, %s1336_s16  ;;  %401 = vrot.lane.b32.xlu1 %v1538_v25, %s1337_s23 }
 0x24f   : > { %517 = vrot.lane.b32.xlu1 %v1538_v25, %s1338_s20  ;;  %s1350_s20 = smov [#allocation6]  }
 0x253   : > { %637 = vrot.lane.b32.xlu1 %v1538_v25, %s1339_s22  ;;  %s1269_s22 = sshll.u32 %s1350_s20, 4  ;;  %s1270_s22 = int_to_ptr.vmem [resolvable:$false] %s1269_s22 }
 0x257   : > { %635 = vrot.lane.b32.xlu1 %v1538_v25, %s1340_s12  ;;  %s1348_s12 = smov 16  }
 0x25b   : > { %757 = vrot.lane.b32.xlu1 %v1538_v25, %s1341_s29  ;;  %s1349_s29 = smov 24  }
 0x25f   : > { %755 = vrot.lane.b32.xlu1 %v1538_v25, %s1342_s17 }
 0x2bd   : > { %v402_v27 = vpop.permute.xlu1 %401  ;;  %v516_v32 = vpop.permute.xlu0 %515 }
 0x2be   : > { %v408_v28 = vsel %vm403_vm2, %v402_v27, 0 }
 0x2bf   : > { %1096 = vmatpush3.bf16.xpose.msra.mxu1 %v408_v28 }
 0x2c0   : > { %1107 = vmatprep.subr.bf16.mxu1 %v1334_v8 }
 0x2c1   : > { %v518_v29 = vpop.permute.xlu1 %517 }
 0x2c2   : > { %v523_v30 = vsel %vm403_vm2, %v518_v29, 0 }
 0x2c5   : > { %v638_v31 = vpop.permute.xlu1 %637 }
 0x2c6   : > { %1098 = vmatmul.mubr.msk.bf16.vlgmr.msra.gmra.mrb[0].mxu1 %vm403_vm2, %v1538_v25  ;;  %v643_v34 = vsel %vm403_vm2, %v638_v31, 0 }
 0x2c7   : > { %1108 = vmatpush3.bf16.xpose.msra.mxu1 %v523_v30  ;;  %1109 = vmatprep.mubr.msk.bf16.mxu1 %vm1335_vm1, %v1334_v8 }
 0x2c8   : > { %1119 = vmatprep.subr.bf16.mxu1 %v1334_v8 }
 0x2c9   : > { %v636_v33 = vpop.permute.xlu1 %635 }
 0x2cd   : > { %v758_v35 = vpop.permute.xlu1 %757 }
 0x2ce   : > { %1110 = vmatmul.mubr.msk.bf16.vlgmr.msra.gmra.mrb[4].mxu1 %vm403_vm2, %v516_v32  ;;  %v763_v36 = vsel %vm403_vm2, %v758_v35, 0 }
 0x2cf   : > { %1120 = vmatpush3.bf16.xpose.msra.mxu1 %v643_v34  ;;  %1121 = vmatprep.mubr.msk.bf16.mxu1 %vm1335_vm1, %v1334_v8 }
 0x2d0   : > { %1131 = vmatprep.subr.bf16.mxu1 %v1334_v8 }
 0x2d1   : > { %v756_v37 = vpop.permute.xlu1 %755 }
 0x2d6   : > { %1122 = vmatmul.mubr.msk.bf16.vlgmr.msra.gmra.mrb[8].mxu1 %vm403_vm2, %v636_v33 }
 0x2d7   : > { %1132 = vmatpush3.bf16.xpose.msra.mxu1 %v763_v36  ;;  %1133 = vmatprep.mubr.msk.bf16.mxu1 %vm1335_vm1, %v1334_v8 }
 0x2d8   : > { %1143 = vmatprep.subr.bf16.mxu1 %v1334_v8 }
 0x2de   : > { %1134 = vmatmul.mubr.msk.bf16.vlgmr.msra.gmra.mrb[12].mxu1 %vm403_vm2, %v756_v37 }
 0x2df   : > { %1147 = vmatprep.mubr.msk.bf16.mxu1 %vm1335_vm1, %v1334_v8 }
 0x399   : > { %v444_v41 = vpop.f32.mrb[0].mxu1 }
 0x39a   : > { %v450_v42 = vsel %vm399_vm3, %v444_v41, -1e+30  ;;  %v1099_v43 = vpop.f32.mrb[1].mxu1 }
 0x39b   : > { %v447_v44 = vpop.f32.mrb[2].mxu1  ;;  %v451_v45 = vsel %vm403_vm2, %v450_v42, -inf }
 0x39c   : > { %452 = vmax.xlane.f32.xlu1 %v451_v45  ;;  %v1100_v46 = vpop.f32.mrb[3].mxu1 }
 0x3a1   : > { %v559_v47 = vpop.f32.mrb[4].mxu1 }
 0x3a2   : > { %v565_v48 = vsel %vm399_vm3, %v559_v47, -1e+30  ;;  %v1111_v49 = vpop.f32.mrb[5].mxu1 }
 0x3a3   : > { %v562_v50 = vpop.f32.mrb[6].mxu1  ;;  %v566_v51 = vsel %vm403_vm2, %v565_v48, -inf }
 0x3a4   : > { %567 = vmax.xlane.f32.xlu0 %v566_v51  ;;  %v1112_v52 = vpop.f32.mrb[7].mxu1 }
 0x3a9   : > { %v679_v53 = vpop.f32.mrb[8].mxu1 }
 0x3aa   : > { %v685_v54 = vsel %vm399_vm3, %v679_v53, -1e+30  ;;  %v1123_v55 = vpop.f32.mrb[9].mxu1 }
 0x3ab   : > { %v682_v56 = vpop.f32.mrb[10].mxu1  ;;  %v686_v57 = vsel %vm403_vm2, %v685_v54, -inf }
 0x3ac   : > { %687 = vmax.xlane.f32.xlu1 %v686_v57  ;;  %v1124_v58 = vpop.f32.mrb[11].mxu1  ;;  %v1215_v57 = vld [vmem:[%s1669_s5] sm:$0xff]  }
 0x3ad   : > { %1144 = vmatpush3.bf16.msra.mxu1 %v1215_v57 }
 0x3ae   : > { %1145 = vmatprep.subr.bf16.mxu1 %v1334_v8 }
 0x3b1   : > { %v799_v59 = vpop.f32.mrb[12].mxu1 }
 0x3b2   : > { %v805_v60 = vsel %vm399_vm3, %v799_v59, -1e+30  ;;  %v1135_v61 = vpop.f32.mrb[13].mxu1  ;;  %v1216_v59 = vld [vmem:[%s1669_s5 + $0x8] sm:$0xff]  }
 0x3b3   : > { %v802_v62 = vpop.f32.mrb[14].mxu1  ;;  %v806_v63 = vsel %vm403_vm2, %v805_v60, -inf  ;;  %1146 = vmatpush3.bf16.msra.mxu1 %v1216_v59 }
 0x3b4   : > { %807 = vmax.xlane.f32.xlu0 %v806_v63  ;;  %v1136_v1 = vpop.f32.mrb[15].mxu1 }
 0x429   : > { %v453_v2 = vpop.xlane.xlu1 %452 }
 0x42a   : > { %v454_v3 = vsub.f32 %v450_v42, %v453_v2 }
 0x42c   : > { %v455_v4 = vmul.f32 1.442695, %v454_v3 }
 0x42e   : > { %1219 = vpow2.f32 %v455_v4 }
 0x431   : > { %v568_v5 = vpop.xlane.xlu0 %567 }
 0x432   : > { %v569_v6 = vsub.f32 %v565_v48, %v568_v5 }
 0x434   : > { %v570_v7 = vmul.f32 1.442695, %v569_v6 }
 0x436   : > { %1221 = vpow2.f32 %v570_v7 }
 0x438   : > { %v1220_v9 = vpop.eup %1219 }
 0x439   : > { %v457_v10 = vsel %vm403_vm2, %v1220_v9, 0.0  ;;  %v688_v18 = vpop.xlane.xlu1 %687 }
 0x43a   : > { %458 = vadd.xlane.f32.xlu1 %v457_v10  ;;  %v689_v19 = vsub.f32 %v685_v54, %v688_v18 }
 0x43c   : > { %v690_v20 = vmul.f32 1.442695, %v689_v19 }
 0x440   : > { %v1222_v11 = vpop.eup %1221 }
 0x441   : > { %v808_v12 = vpop.xlane.xlu0 %807  ;;  %v572_v13 = vsel %vm403_vm2, %v1222_v11, 0.0 }
 0x442   : > { %v809_v14 = vsub.f32 %v805_v60, %v808_v12  ;;  %573 = vadd.xlane.f32.xlu0 %v572_v13 }
 0x444   : > { %v810_v15 = vmul.f32 1.442695, %v809_v14 }
 0x446   : > { %1223 = vpow2.f32 %v810_v15 }
 0x447   : > { %1225 = vpow2.f32 %v690_v20 }
 0x44b   : > { %463 = vrot.lane.b32.xlu1 %v1538_v25, %s1343_s18 }
 0x450   : > { %v1224_v16 = vpop.eup %1223 }
 0x451   : > { %v812_v17 = vsel %vm403_vm2, %v1224_v16, 0.0  ;;  %v1226_v21 = vpop.eup %1225 }
 0x452   : > { %813 = vadd.xlane.f32.xlu0 %v812_v17  ;;  %v692_v22 = vsel %vm403_vm2, %v1226_v21, 0.0 }
 0x468   : > { %578 = vrot.lane.b32.xlu0 %v1538_v25, %s1344_s15  ;;  %s1059_s15 = sshll.u32 %s1412_s28, 7  ;;  %s946_s28 = scalar_lea.sflag [#allocation5], %s1496_s8 }
 0x469   : > { %s1619_s23 = scalar_lea.hbm %s1671_s7, %s1059_s15 }
 0x46f   : > { %693 = vadd.xlane.f32.xlu1 %v692_v22 }
 0x480   : > { %698 = vrot.lane.b32.xlu1 %v1538_v25, %s1345_s19  ;;  %s293_s19 = scalar_lea.vmem [#allocation6], %s1035_s11 }
 0x484   : > { %818 = vrot.lane.b32.xlu1 %v1538_v25, %s1346_s21  ;;  %s959_s21 = sshll.u32 %s293_s19, 4  ;;  %s1621_s21 = int_to_ptr.vmem [resolvable:$true] %s959_s21 }
 0x485   : > { %s1265_s11 = scalar_lea.vmem %s1621_s21, 128  ;;  %p1272_p7 = scmp.lt.s32.totalorder %s1621_s21, %s1270_s22 }
 0x486   : > { %p1266_p6 = scmp.ne.s32.totalorder %s1621_s21, %s1265_s11 }
 0x488   : > { %p1267_p12 = pnand %p1266_p6, %p1680_p11 }
 0x48a   : > { %p1268_p13 = pneg %p1267_p12 }
 0x4c7   : > { %v459_v23 = vpop.xlane.xlu1 %458 }
 0x4c8   : > { %1227 = vrcp.f32 %v459_v23 }
 0x4cb   : > { %v464_v24 = vpop.permute.xlu1 %463 }
 0x4cc   : > { %v470_v26 = vsel %vm468_vm4, %v464_v24, 0 }
 0x4cd   : > { %1102 = vmatpush3.bf16.msra.mxu0 %v470_v26 }
 0x4ce   : > { %1113 = vmatprep.subr.bf16.mxu0 %v1334_v8 }
 0x4cf   : > { %v574_v28 = vpop.xlane.xlu0 %573 }
 0x4d0   : > { %1229 = vrcp.f32 %v574_v28 }
 0x4d2   : > { %v1228_v27 = vpop.eup %1227 }
 0x4d3   : > { %v461_v29 = vmul.f32 %v1228_v27, %v1220_v9 }
 0x4d5   : > { %v462_v30 = vpack.c.bf16 %v461_v29, %v461_v29 }
 0x4d7   : > { %1104 = vmatmul.mubr.msk.bf16.vlgmr.msra.gmra.mrb[4].mxu0 %vm403_vm2, %v462_v30 }
 0x4d8   : > { %1115 = vmatprep.mubr.msk.bf16.mxu0 %vm1335_vm1, %v1334_v8 }
 0x4da   : > { %v1230_v25 = vpop.eup %1229 }
 0x4db   : > { %v576_v32 = vmul.f32 %v1230_v25, %v1222_v11  ;;  %v1057_v11 = vld [vmem:[%s1670_s6] ss:$0 sm:$0xff] }
 0x4dd   : > { %v577_v35 = vpack.c.bf16 %v576_v32, %v576_v32 }
 0x4df   : > { %v814_v31 = vpop.xlane.xlu0 %813 }
 0x4e3   : > { %v579_v33 = vpop.permute.xlu0 %578 }
 0x4e4   : > { %v584_v34 = vsel %vm468_vm4, %v579_v33, 0 }
 0x4e5   : > { %1114 = vmatpush3.bf16.msra.mxu0 %v584_v34 }
 0x4e6   : > { %1125 = vmatprep.subr.bf16.mxu0 %v1334_v8 }
 0x4e8   : > { %1116 = vmatmul.mubr.msk.bf16.vlgmr.msra.gmra.mrb[8].mxu0 %vm403_vm2, %v577_v35 }
 0x4e9   : > { %1127 = vmatprep.mubr.msk.bf16.mxu0 %vm1335_vm1, %v1334_v8 }
 0x4fc   : > { %v694_v36 = vpop.xlane.xlu1 %693 }
 0x4fd   : > { %1231 = vrcp.f32 %v694_v36 }
 0x4fe   : > { %1233 = vrcp.f32 %v814_v31 }
 0x500   : > { %v699_v37 = vpop.permute.xlu1 %698 }
 0x501   : > { %v704_v38 = vsel %vm468_vm4, %v699_v37, 0 }
 0x502   : > { %1126 = vmatpush3.bf16.msra.mxu0 %v704_v38 }
 0x503   : > { %1137 = vmatprep.subr.bf16.mxu0 %v1334_v8 }
 0x504   : > { %v819_v41 = vpop.permute.xlu1 %818 }
 0x505   : > { %v824_v44 = vsel %vm468_vm4, %v819_v41, 0 }
 0x507   : > { %v1232_v39 = vpop.eup %1231 }
 0x508   : > { %v696_v40 = vmul.f32 %v1232_v39, %v1226_v21  ;;  %v1234_v43 = vpop.eup %1233 }
 0x509   : > { %v816_v45 = vmul.f32 %v1234_v43, %v1224_v16 }
 0x50a   : > { %v697_v42 = vpack.c.bf16 %v696_v40, %v696_v40 }
 0x50b   : > { %v817_v46 = vpack.c.bf16 %v816_v45, %v816_v45 }
 0x50c   : > { %1128 = vmatmul.mubr.msk.bf16.vlgmr.msra.gmra.mrb[12].mxu0 %vm403_vm2, %v697_v42 }
 0x50d   : > { %1138 = vmatpush3.bf16.msra.mxu0 %v824_v44  ;;  %1139 = vmatprep.mubr.msk.bf16.mxu0 %vm1335_vm1, %v1334_v8 }
 0x514   : > { %1140 = vmatmul.mubr.msk.bf16.vlgmr.msra.gmra.mrb[16].mxu0 %vm403_vm2, %v817_v46 }
 0x5aa   : > { %v506_v47 = vpop.f32.mrb[4].mxu0 }
 0x5ab   : > { %v512_v48 = vpack.c.bf16 %v506_v47, %v506_v47  ;;  %v1105_v49 = vpop.f32.mrb[5].mxu0 }
 0x5ac   : > { %v509_v50 = vpop.f32.mrb[6].mxu0 }
 0x5ad   : > { %514 = vst.msk [vmem:[#allocation2] sm:$0xf] %vm513_vm5, %v512_v48  ;;  %v1106_v51 = vpop.f32.mrb[7].mxu0 }
 0x5bb   : > { %v620_v52 = vpop.f32.mrb[8].mxu0 }
 0x5bc   : > { %v1062_v53 = vpack.c.bf16 %v620_v52, %v620_v52  ;;  %v1117_v54 = vpop.f32.mrb[9].mxu0 }
 0x5bd   : > { %v623_v55 = vpop.f32.mrb[10].mxu0 }
 0x5be   : > { %630 = vrot.lane.b32.xlu0 %v1062_v53, %s1347_s9  ;;  %v1118_v56 = vpop.f32.mrb[11].mxu0 }
 0x5df   : > { %v740_v58 = vpop.f32.mrb[12].mxu0 }
 0x5e0   : > { %v1063_v60 = vpack.c.bf16 %v740_v58, %v740_v58  ;;  %v1129_v61 = vpop.f32.mrb[13].mxu0 }
 0x5e1   : > { %v743_v62 = vpop.f32.mrb[14].mxu0 }
 0x5e2   : > { %750 = vrot.lane.b32.xlu1 %v1063_v60, %s1348_s12  ;;  %v1130_v63 = vpop.f32.mrb[15].mxu0  ;;  %s1271_s12 = scalar_lea.vmem %s1270_s22, 256 }
 0x5e3   : > { %p1273_p10 = scmp.lt.s32.totalorder %s1271_s12, %s1265_s11 }
 0x5e5   : > { %p1274_p2 = por %p1273_p10, %p1272_p7 }
 0x5e7   : > { %v860_v1 = vpop.f32.mrb[16].mxu0  ;;  %p1275_p4 = pnand %p1274_p2, %p1268_p13 }
 0x5e8   : > { %v1064_v2 = vpack.c.bf16 %v860_v1, %v860_v1  ;;  %v1141_v3 = vpop.f32.mrb[17].mxu0 }
 0x5e9   : > { %v863_v4 = vpop.f32.mrb[18].mxu0 }
 0x5ea   : > { %870 = vrot.lane.b32.xlu0 %v1064_v2, %s1349_s29  ;;  %v1142_v5 = vpop.f32.mrb[19].mxu0 }
 0x630   : > { %v631_v6 = vpop.permute.xlu0 %630 }
 0x631   : > { %634 = vst.msk [vmem:[#allocation2] sm:$0xf] %vm633_vm6, %v631_v6 }
 0x654   : > { %v751_v7 = vpop.permute.xlu1 %750 }
 0x655   : > { %754 = vst.msk [vmem:[#allocation2] sm:$0xf] %vm753_vm7, %v751_v7 }
 0x65c   : > { %v871_v8 = vpop.permute.xlu0 %870 }
 0x65d   : > { %874 = vst.msk [vmem:[#allocation2] sm:$0xf] %vm873_vm8, %v871_v8 }
 0x664   : > { %v875_v9 = vld [vmem:[#allocation2] sm:$0xf] }
 0x665   : > { %1148 = vmatmul.mubr.msk.bf16.vlgmr.msra.gmra.mrb[16].mxu1 %vm296_vm0, %v875_v9 }
 0x738   : > { %v929_v10 = vpop.f32.mrb[16].mxu1 }
 0x739   : > { %v935_v12 = vadd.f32 %v929_v10, %v1506_v0  ;;  %v1149_v13 = vpop.f32.mrb[17].mxu1 }
 0x73a   : > { %v932_v14 = vpop.f32.mrb[18].mxu1 }
 0x73b   : > { %v943_v15 = vadd.f32 %v1057_v11, %v935_v12  ;;  %v1150_v16 = vpop.f32.mrb[19].mxu1 }
 0x73d   : > { %944 = vst.msk [vmem:[%s293_s19] sm:$0xff] %vm296_vm0, %v943_v15 }
 0x73e   : > { %1278 = shalt.err (!%p1275_p4)
}
 0x73f   : > { %s1279_s8 = scalar_lea.hbm %s1619_s23, 128  ;;  %s1283_s18 = scalar_lea.hbm %s1671_s7, 256 }
 0x740   : > { %p1280_p5 = scmp.ne.s32.totalorder %s1619_s23, %s1279_s8  ;;  %p1284_p0 = scmp.lt.u32.totalorder %s1619_s23, %s1671_s7 }
 0x741   : > { %p1285_p1 = scmp.lt.u32.totalorder %s1283_s18, %s1279_s8  ;;  %p1287_p6 = scmp.lt.u32.totalorder %s1279_s8, %s1619_s23 }
 0x742   : > { %p1281_p8 = pnand %p1280_p5, %p1680_p11 }
 0x743   : > { %p1286_p3 = por %p1285_p1, %p1284_p0 }
 0x744   : > { %p1282_p9 = pneg %p1281_p8 }
 0x745   : > { %p1288_p12 = por %p1287_p6, %p1286_p3 }
 0x747   : > { %p1289_p13 = pnand %p1288_p12, %p1282_p9 }
 0x749   : > { %1292 = shalt.err (!%p1289_p13)
}
 0x74a   : > { %1153 = dma.vmem_to_hbm [thread:$0]  (%p1680_p11), %s1621_s21, 128, %s1619_s23, %s946_s28  }
 0x74b PF: > { %s971_s9 = sand.u32 1, %s1319_s24   ;;  %p1681_p7 = scmp.ne.s32.totalorder %s1676_s14, 0 }
 0x74c   : > { %p1682_p10 = scmp.ge.s32.totalorder %s1331_s27, 2  ;;  %s972_s16 = scalar_lea.sflag [#allocation5], %s971_s9 }
 0x74e   : > { %p1160_p2 = pnand %p1682_p10, %p1681_p7 }
 0x750   : > { %1314 = dma.done.wait (!%p1160_p2), %s972_s16, 128  }
 0x751   : > { %1316 = vsyncadd (!%p1160_p2), %s972_s16, 4294967168  ;;  %p20_p4 = scmp.ge.s32.totalorder %s1416_s30, 4   ;;  %s1683_s24 = smov %s1323_s25 }
 0x752   : > { %s1684_s25 = smov %s1327_s26  ;;  %s1685_s26 = smov %s1428_s10 }
 0x753   : > { %s1686_s27 = smov %s1416_s30  ;;  %22 = sbr.rel (!%p20_p4) target bundleno = 5 (0x5), region = 93 }
 0x75a   :  { %977 = vsyncpa [#allocation4], 1 }
 0x75b   :  { %979 = vsyncpa [#allocation4 + $0x1], 1 }
 0x75c   :  { %980 = vsyncpa [#allocation5], 1 }
 0x75d   :  { %982 = vsyncpa [#allocation5 + $0x1], 1 }

</bundles_post_ra>
